<compile_context>
chip_gen: v6e
topology: v6e:2x2x1
jax: 0.10.0
libtpu: 0.0.40
codegen_flags: <defaults>
</compile_context>

<pallas_src>
import functools

import jax
import jax.numpy as jnp
from jax.experimental import pallas as pl
from jax.experimental.pallas import tpu as pltpu


def _pinball_kernel(preds_ref, target_ref, qpat_ref, out_ref, *,
                    tiles_per_shard, tile_rows, total_rows):
    # preds_ref  : (tile_rows, 128)  preds in native lane-interleaved layout
    # target_ref : (tile_rows, 128)  target expanded to the same layout
    # qpat_ref   : (2, 128) f32      row 0 = tiled q, row 1 = tiled (q - 1)
    # out_ref    : (1, 128) f32      per-shard running partial sums (resident)
    c = pl.program_id(0)
    i = pl.program_id(1)

    @pl.when(i == 0)
    def _init():
        out_ref[...] = jnp.zeros_like(out_ref)

    p = preds_ref[...].astype(jnp.float32)
    t = target_ref[...].astype(jnp.float32)
    err = t - p

    # Row-validity mask: covers the ragged last tile (block shape does not
    # divide the row count) and any over-covered grid steps.  Invalid rows
    # hold unspecified VMEM data; zeroing their error zeroes their pinball.
    row0 = (c * tiles_per_shard + i) * tile_rows
    local_row = jax.lax.broadcasted_iota(jnp.int32, (tile_rows, 1), 0)
    err = jnp.where(local_row < (total_rows - row0), err, 0.0)

    qp = qpat_ref[...]                                   # (2, 128)
    pin = jnp.maximum(qp[1:2, :] * err, qp[0:1, :] * err)

    # Reduce the tile to one vreg (VPU adds + one cross-sublane reduce) and
    # accumulate into the resident per-shard output block.
    out_ref[...] += jnp.sum(pin, axis=0, keepdims=True)


def _all_quantile_loss_jax(preds, target, quantiles):
    """Pure-JAX reference mirroring the PyTorch forward."""
    preds = preds.astype(jnp.float32)
    target = target.astype(jnp.float32)
    q = jnp.asarray(quantiles, dtype=jnp.float32)[None, :]
    errors = target[:, None] - preds
    return jnp.mean(jnp.sum(jnp.maximum((q - 1.0) * errors, q * errors), axis=1))


def all_quantile_loss(preds, target, quantiles, *, tile_rows=4096, max_shards=2):
    """Pinball loss. preds: (N, Q), target: (N,), quantiles: (Q,) -> scalar f32."""
    n, nq = preds.shape
    if n == 0 or 128 % nq != 0:
        # TODO(synk): lane-interleaved layout needs Q | 128; plain JAX otherwise.
        return _all_quantile_loss_jax(preds, target, quantiles)

    # Keep f32 / bf16 in their native dtype (bf16 halves HBM traffic); anything
    # else is upcast once.
    if preds.dtype not in (jnp.float32, jnp.bfloat16):
        preds = preds.astype(jnp.float32)
    if target.dtype not in (jnp.float32, jnp.bfloat16):
        target = target.astype(jnp.float32)

    s = 128 // nq                                   # samples per 128-lane row
    n_pad = -(-n // s) * s
    if n_pad != n:
        # Only copies when N is ragged w.r.t. the 128-lane rows; zero rows
        # contribute exactly 0 to the pinball sum.
        preds = jnp.pad(preds, ((0, n_pad - n), (0, 0)))
        target = jnp.pad(target, ((0, n_pad - n),))
    rows = n_pad // s

    # Free (bitcast) reshape of the native row-major buffer; the target is
    # expanded to the same interleaved lane layout in one cheap pass.
    preds_lanes = preds.reshape(rows, 128)
    target_lanes = jnp.repeat(target, nq).reshape(rows, 128)

    q32 = jnp.asarray(quantiles, dtype=jnp.float32).reshape(-1)
    q_tiled = jnp.tile(q32, s).reshape(1, 128)           # lane l -> q[l % nq]
    qpat = jnp.concatenate([q_tiled, q_tiled - 1.0], axis=0)     # (2, 128)

    # Block rows: multiple of the sublane granule, or the full row count.
    granule = 8 if (preds_lanes.dtype.itemsize == 4
                    and target_lanes.dtype.itemsize == 4) else 16
    tr = max(granule, (int(tile_rows) // granule) * granule)
    if rows <= tr:
        tr = rows                                    # single full-extent block

    num_tiles = (rows + tr - 1) // tr
    n_shards = int(max_shards) if (int(max_shards) > 1
                                   and num_tiles >= int(max_shards)) else 1
    tiles_per_shard = -(-num_tiles // n_shards)

    def _blk(c, i):
        # Clamp so over-covered steps (odd tile counts split across shards)
        # stay in-bounds; their rows are fully masked inside the kernel.
        return (jnp.minimum(c * tiles_per_shard + i, num_tiles - 1), 0)

    kernel = functools.partial(
        _pinball_kernel,
        tiles_per_shard=tiles_per_shard, tile_rows=tr, total_rows=rows)

    # VMEM budget: double-buffered input blocks (rows rounded up to the native
    # sublane tile, lanes already dense) + headroom for f32 temporaries.
    rpad = -(-tr // 32) * 32
    in_bytes = rpad * 128 * (preds_lanes.dtype.itemsize
                             + target_lanes.dtype.itemsize)
    tmp_bytes = 8 * rpad * 128 * 4
    vmem_limit = int(min(2 * in_bytes + tmp_bytes + (4 << 20), 100 << 20))

    out = pl.pallas_call(
        kernel,
        out_shape=jax.ShapeDtypeStruct((1, n_shards * 128), jnp.float32),
        grid_spec=pltpu.PrefetchScalarGridSpec(
            num_scalar_prefetch=0,
            grid=(n_shards, tiles_per_shard),
            in_specs=[
                pl.BlockSpec((tr, 128), _blk),
                pl.BlockSpec((tr, 128), _blk),
                pl.BlockSpec((2, 128), lambda c, i: (0, 0)),
            ],
            out_specs=pl.BlockSpec((1, 128), lambda c, i: (0, c)),
        ),
        compiler_params=pltpu.CompilerParams(
            dimension_semantics=("parallel", "arbitrary"),
            vmem_limit_bytes=vmem_limit,
        ),
    )(preds_lanes, target_lanes, qpat)

    # Per-shard / per-lane partial sums -> mean over the TRUE sample count.
    return jnp.sum(out) / jnp.float32(n)


if __name__ == "__main__":
    key = jax.random.PRNGKey(0)
    quantiles = jnp.array([0.05, 0.25, 0.75, 0.95], dtype=jnp.float32)
    k1, k2, k3, k4, k5, k6 = jax.random.split(key, 6)

    # 1) Tiny case: N < samples-per-row -> single padded row, single tile.
    preds1 = jax.random.normal(k1, (8, 4), dtype=jnp.float32)
    target1 = jax.random.normal(k2, (8,), dtype=jnp.float32)
    got1 = jax.block_until_ready(all_quantile_loss(preds1, target1, quantiles))
    want1 = _all_quantile_loss_jax(preds1, target1, quantiles)
    assert jnp.allclose(got1, want1, rtol=1e-5, atol=1e-6), (got1, want1)

    # 2) Ragged N, multiple tiles, 2 shards, partial last block (mask path).
    preds2 = jax.random.normal(k3, (300, 4), dtype=jnp.float32)
    target2 = jax.random.normal(k4, (300,), dtype=jnp.float32)
    got2 = jax.block_until_ready(
        all_quantile_loss(preds2, target2, quantiles, tile_rows=8))
    want2 = _all_quantile_loss_jax(preds2, target2, quantiles)
    assert jnp.allclose(got2, want2, rtol=1e-5, atol=1e-6), (got2, want2)

    # 3) bf16 inputs, zero-copy path (N % 32 == 0), default tile size.
    preds3 = jax.random.normal(k5, (512, 4), dtype=jnp.float32).astype(jnp.bfloat16)
    target3 = jax.random.normal(k6, (512,), dtype=jnp.float32).astype(jnp.bfloat16)
    got3 = jax.block_until_ready(all_quantile_loss(preds3, target3, quantiles))
    want3 = _all_quantile_loss_jax(preds3, target3, quantiles)
    assert jnp.allclose(got3, want3, rtol=1e-4, atol=1e-5), (got3, want3)

    print("KERNEL_OK")
</pallas_src>

<mosaic_0001>
module attributes {stable_mosaic.version = 11 : i64} {
  func.func @_pinball_kernel(%arg0: i32, %arg1: i32, %arg2: memref<1x128xf32, #tpu.memory_space<vmem>>, %arg3: memref<1x128xf32, #tpu.memory_space<vmem>>, %arg4: memref<2x128xf32, #tpu.memory_space<vmem>>, %arg5: memref<1x128xf32, #tpu.memory_space<vmem>>) attributes {dimension_semantics = [#tpu.dimension_semantics<parallel>, #tpu.dimension_semantics<arbitrary>], iteration_bounds = array<i64: 1, 1>, scalar_prefetch = 0 : i64, scratch_operands = 0 : i64, tpu.core_type = #tpu.core_type<tc>, window_params = [{transform_indices = @transform_0, window_bounds = array<i64: 1, 128>}, {transform_indices = @transform_1, window_bounds = array<i64: 1, 128>}, {pipeline_mode = #tpu.pipeline_mode<synchronous>, transform_indices = @transform_2, window_bounds = array<i64: 2, 128>}, {transform_indices = @transform_3, window_bounds = array<i64: 1, 128>}]} {
    %c0_i32 = arith.constant 0 : i32
    %0 = arith.cmpi eq, %arg1, %c0_i32 : i32
    %1 = arith.extui %0 : i1 to i32
    %c0_i32_0 = arith.constant 0 : i32
    %2 = arith.cmpi ne, %1, %c0_i32_0 : i32
    scf.if %2 {
      %cst_13 = arith.constant 0.000000e+00 : f32
      %28 = vector.broadcast %cst_13 : f32 to vector<1x128xf32>
      %c0_14 = arith.constant 0 : index
      %c0_15 = arith.constant 0 : index
      %29 = vector.load %arg5[%c0_14, %c0_15] : memref<1x128xf32, #tpu.memory_space<vmem>>, vector<1x128xf32>
      tpu.vector_store %arg5[%c0_14, %c0_15], %28 {strides = array<i32>} : memref<1x128xf32, #tpu.memory_space<vmem>>, vector<1x128xf32>,
    } else {
    }
    %c0 = arith.constant 0 : index
    %c0_1 = arith.constant 0 : index
    %3 = vector.load %arg2[%c0, %c0_1] : memref<1x128xf32, #tpu.memory_space<vmem>>, vector<1x128xf32>
    %c0_2 = arith.constant 0 : index
    %c0_3 = arith.constant 0 : index
    %4 = vector.load %arg3[%c0_2, %c0_3] : memref<1x128xf32, #tpu.memory_space<vmem>>, vector<1x128xf32>
    %5 = arith.subf %4, %3 : vector<1x128xf32>
    %c1_i32 = arith.constant 1 : i32
    %6 = arith.muli %arg0, %c1_i32 : i32
    %7 = arith.addi %6, %arg1 : i32
    %c1_i32_4 = arith.constant 1 : i32
    %8 = arith.muli %7, %c1_i32_4 : i32
    %9 = tpu.iota {dimensions = array<i32: 0>} : vector<1x1xi32>
    %c1_i32_5 = arith.constant 1 : i32
    %10 = arith.subi %c1_i32_5, %8 : i32
    %11 = vector.broadcast %10 : i32 to vector<1x1xi32>
    %12 = arith.cmpi slt, %9, %11 : vector<1x1xi32>
    %cst = arith.constant 0.000000e+00 : f32
    %13 = vector.shape_cast %12 : vector<1x1xi1> to vector<1x1xi1>
    %14 = vector.broadcast %13 : vector<1x1xi1> to vector<1x128xi1>
    %15 = vector.broadcast %cst : f32 to vector<1x128xf32>
    %16 = arith.select %14, %5, %15 : vector<1x128xi1>, vector<1x128xf32>
    %c0_6 = arith.constant 0 : index
    %c0_7 = arith.constant 0 : index
    %17 = vector.load %arg4[%c0_6, %c0_7] : memref<2x128xf32, #tpu.memory_space<vmem>>, vector<2x128xf32>
    %18 = vector.extract_strided_slice %17 {offsets = [1, 0], sizes = [1, 128], strides = [1, 1]} : vector<2x128xf32> to vector<1x128xf32>
    %19 = arith.mulf %18, %16 : vector<1x128xf32>
    %20 = vector.extract_strided_slice %17 {offsets = [0, 0], sizes = [1, 128], strides = [1, 1]} : vector<2x128xf32> to vector<1x128xf32>
    %21 = arith.mulf %20, %16 : vector<1x128xf32>
    %22 = arith.maximumf %19, %21 : vector<1x128xf32>
    %c0_8 = arith.constant 0 : index
    %c0_9 = arith.constant 0 : index
    %23 = vector.load %arg5[%c0_8, %c0_9] : memref<1x128xf32, #tpu.memory_space<vmem>>, vector<1x128xf32>
    %cst_10 = arith.constant dense<0.000000e+00> : vector<128xf32>
    %24 = vector.multi_reduction <add>, %22, %cst_10 [0] : vector<1x128xf32> to vector<128xf32>
    %25 = vector.shape_cast %24 : vector<128xf32> to vector<1x128xf32>
    %26 = arith.addf %23, %25 : vector<1x128xf32>
    %c0_11 = arith.constant 0 : index
    %c0_12 = arith.constant 0 : index
    %27 = vector.load %arg5[%c0_11, %c0_12] : memref<1x128xf32, #tpu.memory_space<vmem>>, vector<1x128xf32>
    tpu.vector_store %arg5[%c0_11, %c0_12], %26 {strides = array<i32>} : memref<1x128xf32, #tpu.memory_space<vmem>>, vector<1x128xf32>,
    return
  }
  func.func @transform_0(%arg0: i32, %arg1: i32) -> (i32, i32) {
    %c1_i32 = arith.constant 1 : i32
    %0 = arith.muli %arg0, %c1_i32 : i32
    %1 = arith.addi %0, %arg1 : i32
    %c0_i32 = arith.constant 0 : i32
    %2 = arith.minsi %1, %c0_i32 : i32
    %c0_i32_0 = arith.constant 0 : i32
    %c0_i32_1 = arith.constant 0 : i32
    return %2, %c0_i32_0 : i32, i32
  }
  func.func @transform_1(%arg0: i32, %arg1: i32) -> (i32, i32) {
    %c1_i32 = arith.constant 1 : i32
    %0 = arith.muli %arg0, %c1_i32 : i32
    %1 = arith.addi %0, %arg1 : i32
    %c0_i32 = arith.constant 0 : i32
    %2 = arith.minsi %1, %c0_i32 : i32
    %c0_i32_0 = arith.constant 0 : i32
    %c0_i32_1 = arith.constant 0 : i32
    return %2, %c0_i32_0 : i32, i32
  }
  func.func @transform_2(%arg0: i32, %arg1: i32) -> (i32, i32) {
    %c0_i32 = arith.constant 0 : i32
    %c0_i32_0 = arith.constant 0 : i32
    %c0_i32_1 = arith.constant 0 : i32
    return %c0_i32, %c0_i32_0 : i32, i32
  }
  func.func @transform_3(%arg0: i32, %arg1: i32) -> (i32, i32) {
    %c0_i32 = arith.constant 0 : i32
    %c0_i32_0 = arith.constant 0 : i32
    return %c0_i32, %arg0 : i32, i32
  }
}

</mosaic_0001>

<bundles_post_ra>
// kernel: tpu_custom_call.1
= control target key start
LH: loop header
LB: loop body
LE: loop exit
PB: predicated region body
PF: predicated region fallthrough
CT: control target
= control target key end

     0   :  { %8 = vsyncpa [#allocation3], 0  ;;  %s211_s0 = inlined_call_operand.hbm [shape: f32[1,128], index: 0, kind: input, shape index: {}]   ;;  %s212_s1 = inlined_call_operand.vmem [shape: f32[1,128], index: 1, kind: input, shape index: {}]   ;;  %s213_s2 = inlined_call_operand.vmem [shape: f32[2,128], index: 2, kind: input, shape index: {}]   ;;  %s214_s3 = inlined_call_operand.hbm [shape: f32[1,128], index: 3, kind: output, shape index: {}]  }
   0x1   :  { %9 = vsyncpa [#allocation4], 0  ;;  %s175_s12 = smov [#allocation2]  }
   0x2   :  { %s21_s13 = sshll.u32 %s175_s12, 4  ;;  %s22_s13 = int_to_ptr.vmem [resolvable:$true] %s21_s13 }
   0x3   :  { %s139_s14 = scalar_lea.vmem %s22_s13, 16  ;;  %s143_s15 = scalar_lea.vmem %s22_s13, 32 }
   0x4   :  { %p140_p0 = scmp.ne.s32.totalorder %s22_s13, %s139_s14  ;;  %p144_p1 = scmp.lt.s32.totalorder %s22_s13, %s22_s13 }
   0x5   :  { %p145_p2 = scmp.lt.s32.totalorder %s143_s15, %s139_s14 }
   0x7   :  { %p146_p3 = por %p145_p2, %p144_p1 }
   0x9   :  { %p147_p4 = pnand %p146_p3, %p140_p0 }
   0xb   :  { %150 = shalt.err (!%p147_p4)
}
   0xc   :  { %24 = dma.hbm_to_vmem [thread:$0]  %s211_s0, 16, %s22_s13, [#allocation3]  }
   0xd   :  { %171 = dma.done.wait [#allocation3], 16  }
   0xe   :  { %172 = vsyncadd [#allocation3], 4294967280  ;;  %v68_v0 = vlaneseq  ;;  %v176_v1 = vmov 0.0   ;;  %v177_v3 = vmov 1966171168   ;;  %s178_s0 = smov [#allocation5]  }
   0xf   :  { %63 = vst [vmem:[#allocation5] sm:$0x1] %v176_v1  ;;  %v90_v4 = vunpack.c.l.s4 %v177_v3  ;;  %v64_v5 = vld [vmem:[#allocation2] sm:$0x1]  ;;  %v65_v6 = vld [vmem:[%s212_s1] sm:$0x1] }
  0x10   :  { %v69_v2 = vshrl.u32 %v68_v0, 7  ;;  %v66_v7 = vsub.f32 %v65_v6, %v64_v5  ;;  %v76_v8 = vld [vmem:[%s213_s2] sm:$0x3]  ;;  %s113_s22 = sshll.u32 %s178_s0, 4  ;;  %s114_s22 = int_to_ptr.vmem [resolvable:$true] %s113_s22 }
  0x11   :  { %v91_v9 = vunpack.c.0.s8 %v90_v4  ;;  %s151_s1 = scalar_lea.vmem %s114_s22, 16  ;;  %s155_s2 = scalar_lea.vmem %s114_s22, 32 }
  0x12   :  { %vm72_vm0 = vcmp.lt.s32.totalorder %v69_v2, 1  ;;  %p152_p5 = scmp.ne.s32.totalorder %s114_s22, %s151_s1  ;;  %p156_p6 = scmp.lt.s32.totalorder %s114_s22, %s114_s22 }
  0x13   :  { %v75_v10 = vsel %vm72_vm0, %v66_v7, 0.0  ;;  %v94_v15 = vsub.s32 %v91_v9, %v69_v2  ;;  %p157_p7 = scmp.lt.s32.totalorder %s155_s2, %s151_s1 }
  0x14   :  { %v78_v11 = vrot.slane %v75_v10, 7  ;;  %v81_v12 = vmul.f32 %v76_v8, %v75_v10 }
  0x15   :  { %p158_p8 = por %p157_p7, %p156_p6 }
  0x16   :  { %v80_v13 = vmul.f32 %v78_v11, %v76_v8  ;;  %v83_v14 = vrot.slane %v81_v12, 7  ;;  %v86_v19 = vld [vmem:[#allocation5] sm:$0x1] }
  0x17   :  { %p159_p9 = pnand %p158_p8, %p152_p5 }
  0x18   :  { %v85_v16 = vmax.f32 %v80_v13, %v83_v14 }
  0x1a   :  { %v95_v17 = vrot.slane %v85_v16, %v94_v15 }
  0x1c   :  { %v96_v18 = vcombine.high %v95_v17, %v95_v17 }
  0x1e   :  { %v103_v20 = vrot.slane %v96_v18, %v94_v15 }
  0x20   :  { %v105_v21 = vadd.f32 %v103_v20, %v86_v19 }
  0x22   :  { %106 = vst [vmem:[#allocation5] sm:$0x1] %v105_v21 }
  0x23   :  { %162 = shalt.err (!%p159_p9)
}
  0x24   :  { %116 = dma.vmem_to_hbm [thread:$0]  %s114_s22, 16, %s214_s3, [#allocation4]  }
  0x25   :  { %173 = dma.done.wait [#allocation4], 16  }
  0x26   :  { %174 = vsyncadd [#allocation4], 4294967280 }
  0x27   :  { %120 = vsyncpa [#allocation3], 1 }
  0x28   :  { %121 = vsyncpa [#allocation4], 1 }

</bundles_post_ra>
